<compile_context>
chip_gen: v7x
topology: tpu7x:2x2x1
jax: 0.10.0
libtpu: 0.0.40
codegen_flags: <defaults>
</compile_context>

<pallas_src>
import numpy as np
import jax
import jax.numpy as jnp
from jax import lax
from jax.experimental import pallas as pl
from jax.experimental.pallas import tpu as pltpu


# ---------------------------------------------------------------------------
# Reference-only helper (mirrors SapBERTembeddedSOM.init_grid / pdist2)
# ---------------------------------------------------------------------------
def make_grid_dists(m, n):
    x, y = np.meshgrid(range(m), range(n))                     # each (n, m)
    pts = np.stack([x, y]).reshape(2, -1).astype(np.float32)   # (2, m*n)
    sq = (pts ** 2).sum(0)
    d = sq[None, :] + sq[:, None] - 2.0 * pts.T @ pts          # pdist2(X, X, 0)
    return jnp.asarray(d, dtype=jnp.float32)


# ---------------------------------------------------------------------------
# Kernel 1: BMU search + index_add_ scatter statistics (runs once)
# ---------------------------------------------------------------------------
def som_bmu_kernel(xa_ref, cont_ref, used_ref, avg_ref, hit_ref, used_out_ref):
    cont = cont_ref[...]                                   # (C, D) f32
    C, D = cont.shape
    xa = xa_ref[...]                                       # (B, D+1); last col = 1
    x = xa[:, :D]                                          # (B, D)
    B = xa.shape[0]

    # BMU score: 0.5*||c||^2 - x.c   (||x||^2 dropped: constant per row).
    dn_feat = (((1,), (1,)), ((), ()))
    c2_half = lax.dot_general(jnp.full((1, D), 0.5, jnp.float32), cont * cont,
                              dn_feat, preferred_element_type=jnp.float32)   # (1, C)
    prod = lax.dot_general(x, cont, dn_feat,
                           preferred_element_type=jnp.float32)               # (B, C)
    score = c2_half - prod

    col = lax.broadcasted_iota(jnp.int32, (B, C), 1)
    min_val = jnp.min(score, axis=1, keepdims=True)
    min_idx = jnp.min(jnp.where(score == min_val, col, C), axis=1, keepdims=True)
    onehot = (col == min_idx).astype(jnp.float32)                            # (B, C)

    # Lane-dense per-unit stats: grid_used += (freq != 0).
    freq_row = jnp.sum(onehot, axis=0, keepdims=True)                        # (1, C)
    hit_row = freq_row > 0.0
    hit_ref[...] = hit_row.astype(jnp.float32)
    used_out_ref[...] = used_ref[...] + hit_row.astype(jnp.int32)

    # index_add_ scatter via one one-hot matmul; the appended ones column of
    # xa yields the per-unit count in the same pass (column layout, no extra
    # N=1 matmul).
    dn_batch = (((0,), (0,)), ((), ()))
    sums_freq = lax.dot_general(onehot, xa, dn_batch,
                                preferred_element_type=jnp.float32)          # (C, D+1)
    sums = sums_freq[:, :D]
    freq_col = sums_freq[:, D:]                                              # (C, 1)
    hit_col = freq_col > 0.0
    # avg_data; unused rows fall back to the current contents (as in PyTorch).
    avg = jnp.where(hit_col, sums / jnp.where(hit_col, freq_col, 1.0), cont)
    avg_ref[...] = avg.astype(jnp.bfloat16)                  # bf16 handoff to call 2


# ---------------------------------------------------------------------------
# Kernel 2: Gaussian-neighbourhood update (1-D grid over SOM-row tiles)
# ---------------------------------------------------------------------------
def som_update_kernel(avg_ref, cont_ref, meta_ref, ccoord_ref,
                      newc_ref, change_ref):
    meta = meta_ref[...]                       # (tc, 4): [x, y, hit, row_sum]
    rx = meta[:, 0:1]                          # coords pre-scaled by 1/(sigma*sqrt(2))
    ry = meta[:, 1:2]
    hit = meta[:, 2:3] > 0.0
    rs = meta[:, 3:4]                          # exact sum_j w_ij (separable, wrapper)

    cx = ccoord_ref[0:1, :]                    # (1, C_pad)
    cy = ccoord_ref[1:2, :]
    dx = rx - cx
    dy = ry - cy
    # Gaussian weights computed on the fly (no O(C^2) HBM stream); bf16
    # operands -> single-pass MXU, f32 accumulation.
    w = jnp.exp(-(dx * dx + dy * dy)).astype(jnp.bfloat16)               # (tc, C_pad)

    num = jnp.dot(w, avg_ref[...], preferred_element_type=jnp.float32)   # (tc, D)

    cont_t = cont_ref[...]                     # (tc, D) old contents
    # PyTorch's per-row freq scaling cancels between numerator and denominator,
    # so hit rows get num / row_sum and non-hit rows keep their old contents.
    new_t = jnp.where(hit, num / rs, cont_t)
    newc_ref[...] = new_t

    diff = new_t - cont_t
    change_ref[...] = jnp.sqrt(jnp.sum(diff * diff, axis=1, keepdims=True))


# ---------------------------------------------------------------------------
# Generation-aware tiling / VMEM budget
# ---------------------------------------------------------------------------
def _tpu_defaults():
    """(row_tile_target, vmem_limit_bytes) per TPU generation."""
    kind = ""
    try:
        kind = jax.devices()[0].device_kind.lower()
    except Exception:
        pass
    if "v5 lite" in kind or "v5e" in kind or "v5lite" in kind:
        return 128, 100 * 2 ** 20          # 128-wide MXU, 128 MiB VMEM
    if "v6" in kind or "trillium" in kind:
        return 512, 100 * 2 ** 20          # 256-wide MXU, 128 MiB VMEM
    if "v7" in kind:
        return 256, 48 * 2 ** 20           # 256-wide MXU, only 64 MiB VMEM
    return 256, 64 * 2 ** 20


def _row_tile(C, target):
    c8 = ((C + 7) // 8) * 8
    return max(8, min(target, c8))


# ---------------------------------------------------------------------------
# Wrapper (functional: returns new state + loss instead of in-place mutation)
# ---------------------------------------------------------------------------
def som_forward(embedded, contents, grid_used, sigma):
    m, n, dim = contents.shape
    C = m * n
    B = embedded.shape[0]
    sigma = float(sigma)

    x = embedded.astype(jnp.float32)
    x_aug = jnp.concatenate([x, jnp.ones((B, 1), jnp.float32)], axis=1)   # ones col -> freq
    cont_flat = contents.reshape(C, dim).astype(jnp.float32)
    used_row = grid_used.reshape(1, C).astype(jnp.int32)   # int32 (torch uses int64)

    tile_target, vmem_limit = _tpu_defaults()

    # ------------------- call 1: BMU search + scatter statistics ------------
    bmu_cost = pl.CostEstimate(
        flops=int(4 * B * C * dim + 6 * B * C + 3 * C * dim),
        transcendentals=0,
        bytes_accessed=int(4 * (B * (dim + 1) + C * dim + 2 * C) + 2 * C * dim))
    avg_b16, hit_row, new_used = pl.pallas_call(
        som_bmu_kernel,
        out_shape=(jax.ShapeDtypeStruct((C, dim), jnp.bfloat16),
                   jax.ShapeDtypeStruct((1, C), jnp.float32),
                   jax.ShapeDtypeStruct((1, C), jnp.int32)),
        grid_spec=pltpu.PrefetchScalarGridSpec(
            num_scalar_prefetch=0,
            grid=(1,),
            in_specs=[pl.BlockSpec((B, dim + 1), lambda i: (0, 0)),
                      pl.BlockSpec((C, dim), lambda i: (0, 0)),
                      pl.BlockSpec((1, C), lambda i: (0, 0))],
            out_specs=[pl.BlockSpec((C, dim), lambda i: (0, 0)),
                       pl.BlockSpec((1, C), lambda i: (0, 0)),
                       pl.BlockSpec((1, C), lambda i: (0, 0))]),
        input_output_aliases={2: 2},             # grid_used updated in place
        cost_estimate=bmu_cost,
        compiler_params=pltpu.CompilerParams(
            dimension_semantics=("arbitrary",),
            vmem_limit_bytes=vmem_limit),
    )(x_aug, cont_flat, used_row)

    # ------------------- call 2: Gaussian-neighbourhood update --------------
    tc = _row_tile(C, tile_target)
    steps = -(-C // tc)
    C_pad = steps * tc

    # Per-unit grid coordinates (unit k at (k % m, k // m), matching pdist2 on
    # the torch meshgrid), pre-scaled so w = exp(-(dx^2 + dy^2)).
    inv = 1.0 / (sigma * np.sqrt(2.0))
    k = np.arange(C_pad)
    px = (k % m).astype(np.float32) * inv
    py = (k // m).astype(np.float32) * inv
    ccoords = jnp.asarray(np.stack([px, py]), dtype=jnp.float32)        # (2, C_pad)

    # Exact row sums of the Gaussian weights via Kronecker separability.
    ax = np.arange(m, dtype=np.float32)
    ay = np.arange(n, dtype=np.float32)
    sx = np.exp(-((ax[:, None] - ax[None, :]) ** 2) / (2.0 * sigma ** 2)).sum(1)
    sy = np.exp(-((ay[:, None] - ay[None, :]) ** 2) / (2.0 * sigma ** 2)).sum(1)
    rs = np.ones(C_pad, np.float32)
    rs[:C] = (sy[:, None] * sx[None, :]).reshape(C)

    hit_col = hit_row.reshape(C, 1)
    if C_pad != C:                               # zero padding is inert (see kernel)
        pad = C_pad - C
        hit_col = jnp.concatenate([hit_col, jnp.zeros((pad, 1), jnp.float32)], 0)
        avg_p = jnp.concatenate([avg_b16, jnp.zeros((pad, dim), jnp.bfloat16)], 0)
        cont_p = jnp.concatenate([cont_flat, jnp.zeros((pad, dim), jnp.float32)], 0)
    else:
        avg_p, cont_p = avg_b16, cont_flat
    meta = jnp.concatenate([jnp.asarray(px).reshape(C_pad, 1),
                            jnp.asarray(py).reshape(C_pad, 1),
                            hit_col,
                            jnp.asarray(rs).reshape(C_pad, 1)], axis=1)   # (C_pad, 4)

    upd_cost = pl.CostEstimate(
        flops=int(2 * C_pad * C_pad * dim + 8 * C_pad * C_pad + 6 * C_pad * dim),
        transcendentals=int(C_pad * C_pad),
        bytes_accessed=int(2 * C_pad * dim + 8 * C_pad * dim + 28 * C_pad))

    new_cont_p, unit_change = pl.pallas_call(
        som_update_kernel,
        out_shape=(jax.ShapeDtypeStruct((C_pad, dim), jnp.float32),
                   jax.ShapeDtypeStruct((C_pad, 1), jnp.float32)),
        grid_spec=pltpu.PrefetchScalarGridSpec(
            num_scalar_prefetch=0,
            grid=(steps,),
            in_specs=[pl.BlockSpec((C_pad, dim), lambda i: (0, 0)),  # avg (resident, bf16)
                      pl.BlockSpec((tc, dim), lambda i: (i, 0)),     # contents (streamed)
                      pl.BlockSpec((tc, 4), lambda i: (i, 0)),       # [x, y, hit, row_sum]
                      pl.BlockSpec((2, C_pad), lambda i: (0, 0))],   # unit coords (resident)
            out_specs=[pl.BlockSpec((tc, dim), lambda i: (i, 0)),
                       pl.BlockSpec((tc, 1), lambda i: (i, 0))]),
        input_output_aliases={1: 0},             # contents updated in place
        cost_estimate=upd_cost,
        compiler_params=pltpu.CompilerParams(
            dimension_semantics=("parallel",),   # tiles independent -> both v7x cores
            vmem_limit_bytes=vmem_limit),
    )(avg_p, cont_p, meta, ccoords)

    new_cont = new_cont_p[:C]
    loss = jnp.sum(unit_change[:C, 0])           # loss = sum_units ||new - old||_2
    return new_cont.reshape(m, n, dim), new_used.reshape(m, n), loss


# ---------------------------------------------------------------------------
# Pure-JAX reference (mirrors the PyTorch forward semantics)
# ---------------------------------------------------------------------------
def ref_forward(embedded, cont_flat, grid_dists, used_flat, sigma):
    C, D = cont_flat.shape
    dist = jnp.sum((embedded[:, None, :] - cont_flat[None, :, :]) ** 2, -1)
    min_idx = jnp.argmin(dist, axis=1)
    freq = jnp.zeros(C, jnp.float32).at[min_idx].add(1.0)
    sums = jnp.zeros((C, D), jnp.float32).at[min_idx].add(embedded)
    hit = freq[:, None] > 0
    avg = jnp.where(hit, sums / jnp.where(hit, freq[:, None], 1.0), cont_flat)
    w = jnp.exp(-grid_dists / (2.0 * sigma ** 2))
    fw = w * freq[:, None]                  # PyTorch broadcast: rows scaled by freq
    num = fw @ avg
    denom = fw.sum(1, keepdims=True)
    upd = denom != 0
    new_c = jnp.where(upd, num / jnp.where(upd, denom, 1.0), cont_flat)
    new_used = used_flat + (freq != 0).astype(jnp.int32)
    loss = jnp.sum(jnp.sqrt(jnp.sum((new_c - cont_flat) ** 2, -1)))
    return new_c, new_used, loss


if __name__ == "__main__":
    m, n, dim, B = 8, 8, 32, 16
    C = m * n
    sigma = max(m, n) / 2.0   # module default sigma
    # NOTE: `it` (iteration count) and `alpha` are unused in the original forward.

    key = jax.random.PRNGKey(0)
    k1, k2 = jax.random.split(key)
    contents = jax.random.normal(k1, (m, n, dim), jnp.float32)   # give_grid(m, n, dim)
    embedded = jax.random.normal(k2, (B, dim), jnp.float32)      # stands in for SapBERT CLS reps
    grid_used = jnp.zeros((m, n), jnp.int32)

    # Reference computed first (the kernels write contents/grid_used in place
    # via input_output_aliases).
    ref_c, ref_u, ref_l = jax.block_until_ready(
        ref_forward(embedded, contents.reshape(C, dim), make_grid_dists(m, n),
                    grid_used.reshape(C), sigma))

    new_contents, new_used, loss = som_forward(embedded, contents, grid_used, sigma)
    jax.block_until_ready((new_contents, new_used, loss))

    assert np.allclose(np.asarray(new_contents).reshape(C, dim), np.asarray(ref_c),
                       atol=2e-2, rtol=2e-2)          # bf16 MXU operands in call 2
    assert np.array_equal(np.asarray(new_used).reshape(C), np.asarray(ref_u))
    assert np.allclose(float(loss), float(ref_l), atol=2e-2, rtol=2e-2)
    print("KERNEL_OK")
</pallas_src>

<mosaic_0001>
module attributes {stable_mosaic.version = 11 : i64} {
  func.func @som_bmu_kernel(%arg0: i32, %arg1: memref<16x33xf32, #tpu.memory_space<vmem>>, %arg2: memref<64x32xf32, #tpu.memory_space<vmem>>, %arg3: memref<1x64xi32, #tpu.memory_space<vmem>>, %arg4: memref<64x32xbf16, #tpu.memory_space<vmem>>, %arg5: memref<1x64xf32, #tpu.memory_space<vmem>>, %arg6: memref<1x64xi32, #tpu.memory_space<vmem>>) attributes {dimension_semantics = [#tpu.dimension_semantics<arbitrary>], iteration_bounds = array<i64: 1>, scalar_prefetch = 0 : i64, scratch_operands = 0 : i64, tpu.core_type = #tpu.core_type<tc>, window_params = [{pipeline_mode = #tpu.pipeline_mode<synchronous>, transform_indices = @transform_0, window_bounds = array<i64: 16, 33>}, {pipeline_mode = #tpu.pipeline_mode<synchronous>, transform_indices = @transform_1, window_bounds = array<i64: 64, 32>}, {pipeline_mode = #tpu.pipeline_mode<synchronous>, transform_indices = @transform_2, window_bounds = array<i64: 1, 64>}, {pipeline_mode = #tpu.pipeline_mode<synchronous>, transform_indices = @transform_3, window_bounds = array<i64: 64, 32>}, {pipeline_mode = #tpu.pipeline_mode<synchronous>, transform_indices = @transform_4, window_bounds = array<i64: 1, 64>}, {pipeline_mode = #tpu.pipeline_mode<synchronous>, transform_indices = @transform_5, window_bounds = array<i64: 1, 64>}]} {
    %c0 = arith.constant 0 : index
    %c0_0 = arith.constant 0 : index
    %0 = vector.load %arg2[%c0, %c0_0] : memref<64x32xf32, #tpu.memory_space<vmem>>, vector<64x32xf32>
    %c0_1 = arith.constant 0 : index
    %c0_2 = arith.constant 0 : index
    %1 = vector.load %arg1[%c0_1, %c0_2] : memref<16x33xf32, #tpu.memory_space<vmem>>, vector<16x33xf32>
    %2 = vector.extract_strided_slice %1 {offsets = [0, 0], sizes = [16, 32], strides = [1, 1]} : vector<16x33xf32> to vector<16x32xf32>
    %cst = arith.constant 5.000000e-01 : f32
    %3 = vector.broadcast %cst : f32 to vector<1x32xf32>
    %4 = arith.mulf %0, %0 : vector<64x32xf32>
    %cst_3 = arith.constant dense<0.000000e+00> : vector<1x64xf32>
    %5 = tpu.matmul %3, %4, %cst_3 {dimension_numbers = #tpu.dot_dimension_numbers<[1], [1], [0], [0], [0, 0, 1, 0], [], []>} : vector<1x32xf32>, vector<64x32xf32>, vector<1x64xf32> -> vector<1x64xf32>
    %cst_4 = arith.constant dense<0.000000e+00> : vector<16x64xf32>
    %6 = tpu.matmul %2, %0, %cst_4 {dimension_numbers = #tpu.dot_dimension_numbers<[1], [1], [0], [0], [0, 0, 1, 0], [], []>} : vector<16x32xf32>, vector<64x32xf32>, vector<16x64xf32> -> vector<16x64xf32>
    %7 = vector.broadcast %5 : vector<1x64xf32> to vector<16x64xf32>
    %8 = arith.subf %7, %6 : vector<16x64xf32>
    %9 = tpu.iota {dimensions = array<i32: 1>} : vector<16x64xi32>
    %cst_5 = arith.constant dense<0x7F800000> : vector<16xf32>
    %10 = vector.multi_reduction <minimumf>, %8, %cst_5 [1] : vector<16x64xf32> to vector<16xf32>
    %11 = vector.shape_cast %10 : vector<16xf32> to vector<16x1xf32>
    %12 = vector.broadcast %11 : vector<16x1xf32> to vector<16x64xf32>
    %13 = arith.cmpf oeq, %8, %12 : vector<16x64xf32>
    %c64_i32 = arith.constant 64 : i32
    %14 = vector.broadcast %c64_i32 : i32 to vector<16x64xi32>
    %15 = arith.select %13, %9, %14 : vector<16x64xi1>, vector<16x64xi32>
    %cst_6 = arith.constant dense<2147483647> : vector<16xi32>
    %16 = vector.multi_reduction <minsi>, %15, %cst_6 [1] : vector<16x64xi32> to vector<16xi32>
    %17 = vector.shape_cast %16 : vector<16xi32> to vector<16x1xi32>
    %18 = vector.broadcast %17 : vector<16x1xi32> to vector<16x64xi32>
    %19 = arith.cmpi eq, %9, %18 : vector<16x64xi32>
    %20 = arith.extui %19 : vector<16x64xi1> to vector<16x64xi32>
    %21 = arith.sitofp %20 : vector<16x64xi32> to vector<16x64xf32>
    %cst_7 = arith.constant dense<0.000000e+00> : vector<64xf32>
    %22 = vector.multi_reduction <add>, %21, %cst_7 [0] : vector<16x64xf32> to vector<64xf32>
    %23 = vector.shape_cast %22 : vector<64xf32> to vector<1x64xf32>
    %cst_8 = arith.constant 0.000000e+00 : f32
    %24 = vector.broadcast %cst_8 : f32 to vector<1x64xf32>
    %25 = arith.cmpf ogt, %23, %24 : vector<1x64xf32>
    %26 = arith.extui %25 : vector<1x64xi1> to vector<1x64xi32>
    %27 = arith.sitofp %26 : vector<1x64xi32> to vector<1x64xf32>
    %c0_9 = arith.constant 0 : index
    %c0_10 = arith.constant 0 : index
    %28 = vector.load %arg5[%c0_9, %c0_10] : memref<1x64xf32, #tpu.memory_space<vmem>>, vector<1x64xf32>
    tpu.vector_store %arg5[%c0_9, %c0_10], %27 {strides = array<i32>} : memref<1x64xf32, #tpu.memory_space<vmem>>, vector<1x64xf32>,
    %c0_11 = arith.constant 0 : index
    %c0_12 = arith.constant 0 : index
    %29 = vector.load %arg3[%c0_11, %c0_12] : memref<1x64xi32, #tpu.memory_space<vmem>>, vector<1x64xi32>
    %30 = arith.extui %25 : vector<1x64xi1> to vector<1x64xi32>
    %31 = arith.addi %29, %30 : vector<1x64xi32>
    %c0_13 = arith.constant 0 : index
    %c0_14 = arith.constant 0 : index
    %32 = vector.load %arg6[%c0_13, %c0_14] : memref<1x64xi32, #tpu.memory_space<vmem>>, vector<1x64xi32>
    tpu.vector_store %arg6[%c0_13, %c0_14], %31 {strides = array<i32>} : memref<1x64xi32, #tpu.memory_space<vmem>>, vector<1x64xi32>,
    %cst_15 = arith.constant dense<0.000000e+00> : vector<64x33xf32>
    %33 = tpu.matmul %21, %1, %cst_15 {dimension_numbers = #tpu.dot_dimension_numbers<[0], [0], [1], [1], [0, 1, 1, 1], [], []>} : vector<16x64xf32>, vector<16x33xf32>, vector<64x33xf32> -> vector<64x33xf32>
    %34 = vector.extract_strided_slice %33 {offsets = [0, 0], sizes = [64, 32], strides = [1, 1]} : vector<64x33xf32> to vector<64x32xf32>
    %35 = vector.extract_strided_slice %33 {offsets = [0, 32], sizes = [64, 1], strides = [1, 1]} : vector<64x33xf32> to vector<64x1xf32>
    %cst_16 = arith.constant 0.000000e+00 : f32
    %36 = vector.broadcast %cst_16 : f32 to vector<64x1xf32>
    %37 = arith.cmpf ogt, %35, %36 : vector<64x1xf32>
    %cst_17 = arith.constant 1.000000e+00 : f32
    %38 = vector.broadcast %cst_17 : f32 to vector<64x1xf32>
    %39 = arith.select %37, %35, %38 : vector<64x1xi1>, vector<64x1xf32>
    %40 = vector.broadcast %39 : vector<64x1xf32> to vector<64x32xf32>
    %41 = arith.divf %34, %40 : vector<64x32xf32>
    %42 = vector.shape_cast %37 : vector<64x1xi1> to vector<64x1xi1>
    %43 = vector.broadcast %42 : vector<64x1xi1> to vector<64x32xi1>
    %44 = arith.select %43, %41, %0 : vector<64x32xi1>, vector<64x32xf32>
    %45 = arith.truncf %44 : vector<64x32xf32> to vector<64x32xbf16>
    %c0_18 = arith.constant 0 : index
    %c0_19 = arith.constant 0 : index
    %46 = vector.load %arg4[%c0_18, %c0_19] : memref<64x32xbf16, #tpu.memory_space<vmem>>, vector<64x32xbf16>
    tpu.vector_store %arg4[%c0_18, %c0_19], %45 {strides = array<i32>} : memref<64x32xbf16, #tpu.memory_space<vmem>>, vector<64x32xbf16>,
    return
  }
  func.func @transform_0(%arg0: i32) -> (i32, i32) {
    %c0_i32 = arith.constant 0 : i32
    %c0_i32_0 = arith.constant 0 : i32
    %c0_i32_1 = arith.constant 0 : i32
    return %c0_i32, %c0_i32_0 : i32, i32
  }
  func.func @transform_1(%arg0: i32) -> (i32, i32) {
    %c0_i32 = arith.constant 0 : i32
    %c0_i32_0 = arith.constant 0 : i32
    %c0_i32_1 = arith.constant 0 : i32
    return %c0_i32, %c0_i32_0 : i32, i32
  }
  func.func @transform_2(%arg0: i32) -> (i32, i32) {
    %c0_i32 = arith.constant 0 : i32
    %c0_i32_0 = arith.constant 0 : i32
    %c0_i32_1 = arith.constant 0 : i32
    return %c0_i32, %c0_i32_0 : i32, i32
  }
  func.func @transform_3(%arg0: i32) -> (i32, i32) {
    %c0_i32 = arith.constant 0 : i32
    %c0_i32_0 = arith.constant 0 : i32
    %c0_i32_1 = arith.constant 0 : i32
    return %c0_i32, %c0_i32_0 : i32, i32
  }
  func.func @transform_4(%arg0: i32) -> (i32, i32) {
    %c0_i32 = arith.constant 0 : i32
    %c0_i32_0 = arith.constant 0 : i32
    %c0_i32_1 = arith.constant 0 : i32
    return %c0_i32, %c0_i32_0 : i32, i32
  }
  func.func @transform_5(%arg0: i32) -> (i32, i32) {
    %c0_i32 = arith.constant 0 : i32
    %c0_i32_0 = arith.constant 0 : i32
    %c0_i32_1 = arith.constant 0 : i32
    return %c0_i32, %c0_i32_0 : i32, i32
  }
}

</mosaic_0001>

<bundles_post_ra>
// kernel: tpu_custom_call.1
= control target key start
LH: loop header
LB: loop body
LE: loop exit
PB: predicated region body
PF: predicated region fallthrough
CT: control target
= control target key end

     0   :  { %11 = vsyncpa [#allocation3], 0  ;;  %s1353_s0 = inlined_call_operand.hbm [shape: f32[16,33], index: 0, kind: input, shape index: {}]   ;;  %s1354_s1 = inlined_call_operand.hbm [shape: f32[64,32], index: 1, kind: input, shape index: {}]   ;;  %s1355_s2 = inlined_call_operand.hbm [shape: s32[1,64], index: 2, kind: input, shape index: {}, may-alias: {2,5}]   ;;  %s1356_s3 = inlined_call_operand.hbm [shape: bf16[64,32], index: 3, kind: output, shape index: {0}]   ;;  %s1357_s4 = inlined_call_operand.hbm [shape: f32[1,64], index: 4, kind: output, shape index: {1}]   ;;  %s1358_s5 = inlined_call_operand.hbm [shape: s32[1,64], index: 5, kind: output, shape index: {2}, may-alias: {2,5}]  }
   0x1   :  { %12 = vsyncpa [#allocation6], 0 }
   0x2   :  { %13 = vsyncpa [#allocation4], 0 }
   0x3   :  { %14 = vsyncpa [#allocation10], 0  ;;  %s1068_s18 = smov [#allocation5]   ;;  %s1069_s20 = smov [#allocation2]  }
   0x4   :  { %s32_s19 = sshll.u32 %s1068_s18, 4  ;;  %s20_s21 = sshll.u32 %s1069_s20, 4  ;;  %s33_s19 = int_to_ptr.vmem [resolvable:$true] %s32_s19  ;;  %s1114_s21 = int_to_ptr.vmem [resolvable:$true] %s20_s21 }
   0x5   :  { %s928_s24 = scalar_lea.hbm %s1354_s1, 1024 }
   0x6   :  { %p929_p0 = scmp.ne.s32.totalorder %s1354_s1, %s928_s24  ;;  %p932_p1 = scmp.lt.u32.totalorder %s928_s24, %s1354_s1 }
   0x8   :  { %p934_p2 = pnand %p932_p1, %p929_p0 }
   0xa   :  { %937 = shalt.err (!%p934_p2)
}
   0xb   :  { %s938_s29 = scalar_lea.vmem %s33_s19, 1024  ;;  %p943_p4 = scmp.lt.s32.totalorder %s33_s19, %s33_s19 }
   0xc   :  { %p939_p3 = scmp.ne.s32.totalorder %s33_s19, %s938_s29  ;;  %p944_p5 = scmp.lt.s32.totalorder %s938_s29, %s938_s29 }
   0xe   :  { %p945_p6 = por %p944_p5, %p943_p4 }
  0x10   :  { %p946_p7 = pnand %p945_p6, %p939_p3 }
  0x12   :  { %949 = shalt.err (!%p946_p7)
}
  0x13   :  { %s1070_s30 = smov 128   ;;  %s1071_s6 = smov 8  }
  0x14   :  { %38 = dma.hbm_to_vmem [thread:$0]  %s1354_s1, 1024, %s33_s19, [#allocation6], %s1070_s30, %s1070_s30, %s1071_s6  }
  0x15   :  { %s950_s11 = scalar_lea.hbm %s1353_s0, 256 }
  0x16   :  { %p951_p8 = scmp.ne.s32.totalorder %s1353_s0, %s950_s11  ;;  %p954_p9 = scmp.lt.u32.totalorder %s950_s11, %s1353_s0 }
  0x18   :  { %p956_p10 = pnand %p954_p9, %p951_p8 }
  0x1a   :  { %959 = shalt.err (!%p956_p10)
}
  0x1b   :  { %s960_s16 = scalar_lea.vmem %s1114_s21, 256  ;;  %p965_p12 = scmp.lt.s32.totalorder %s1114_s21, %s1114_s21 }
  0x1c   :  { %p961_p11 = scmp.ne.s32.totalorder %s1114_s21, %s960_s16  ;;  %p966_p13 = scmp.lt.s32.totalorder %s960_s16, %s960_s16 }
  0x1e   :  { %p967_p0 = por %p966_p13, %p965_p12 }
  0x20   :  { %p968_p1 = pnand %p967_p0, %p961_p11 }
  0x22   :  { %971 = shalt.err (!%p968_p1)
}
  0x23   :  { %26 = dma.hbm_to_vmem [thread:$0]  %s1353_s0, 256, %s1114_s21, [#allocation3], %s1070_s30, %s1070_s30, %s1071_s6  }
  0x24   :  { %s1072_s18 = smov [#allocation7]   ;;  %s972_s23 = scalar_lea.hbm %s1355_s2, 16 }
  0x25   :  { %s45_s19 = sshll.u32 %s1072_s18, 4  ;;  %p973_p2 = scmp.ne.s32.totalorder %s1355_s2, %s972_s23  ;;  %s46_s19 = int_to_ptr.vmem [resolvable:$true] %s45_s19 }
  0x26   :  { %p976_p3 = scmp.lt.u32.totalorder %s972_s23, %s1355_s2 }
  0x28   :  { %p978_p4 = pnand %p976_p3, %p973_p2 }
  0x2a   :  { %981 = shalt.err (!%p978_p4)
}
  0x2b   :  { %s982_s28 = scalar_lea.vmem %s46_s19, 16  ;;  %s986_s0 = scalar_lea.vmem %s46_s19, 32 }
  0x2c   :  { %p983_p5 = scmp.ne.s32.totalorder %s46_s19, %s982_s28  ;;  %p987_p6 = scmp.lt.s32.totalorder %s46_s19, %s46_s19 }
  0x2d   :  { %p988_p7 = scmp.lt.s32.totalorder %s986_s0, %s982_s28 }
  0x2f   :  { %p989_p8 = por %p988_p7, %p987_p6 }
  0x31   :  { %p990_p9 = pnand %p989_p8, %p983_p5 }
  0x33   :  { %993 = shalt.err (!%p990_p9)
}
  0x34   :  { %48 = dma.hbm_to_vmem [thread:$0]  %s1355_s2, 16, %s46_s19, [#allocation6]  }
  0x35   :  { %1060 = dma.done.wait [#allocation3], 256  }
  0x36   :  { %1061 = vsyncadd [#allocation3], 4294967040 }
  0x37   :  { %1062 = dma.done.wait [#allocation6], 1040  }
  0x38   :  { %1063 = vsyncadd [#allocation6], 4294966256  ;;  %v1073_v0 = vmov 0.0|0.0   ;;  %vm1074_vm0 = vmmov 0   ;;  %v1075_v1 = vmov 0.0   ;;  %vm76_vm1 = vcmask 261120  }
  0x39   :  { %848 = vmatprep.subr.bf16.mxu0 %v1073_v0  ;;  %810 = vmatprep.mubr.msk.f32.mxu0 %vm1074_vm0, %v1075_v1  ;;  %vm1160_vm2 = vmpackc.low %vm76_vm1, %vm76_vm1  ;;  %v1164_v3 = vld [vmem:[#allocation5] sm:$0xff]  ;;  %v1166_v4 = vld [vmem:[#allocation5 + $0x8] sm:$0xff]  ;;  %v1076_v30 = vmov 0.5   ;;  %v279_v31 = vlaneseq  ;;  %vm287_vm3 = vcmask 523264   ;;  %vm346_vm10 = vcmask 516096   ;;  %s1079_s2 = smov [#allocation9]  }
  0x3a   :  { %v1168_v5 = vld [vmem:[#allocation5 + $0x10] sm:$0xff]  ;;  %v864_v6 = vpack.c.bf16 %v1166_v4, %v1164_v3  ;;  %v68_v7 = vmul.f32 %v1164_v3, %v1164_v3  ;;  %v69_v8 = vmul.f32 %v1166_v4, %v1166_v4  ;;  %v1176_v9 = vld [vmem:[#allocation5 + $0x18] sm:$0xff]  ;;  %v1193_v15 = vld [vmem:[#allocation5 + $0x20] sm:$0xff]  ;;  %vm383_vm12 = vcmask 130048   ;;  %s692_s30 = sshll.u32 %s1079_s2, 4  ;;  %s693_s30 = int_to_ptr.vmem [resolvable:$true] %s692_s30 }
  0x3b   :  { %v870_v10 = vpack.c.bf16 %v1176_v9, %v1168_v5  ;;  %v66_v11 = vld [vmem:[#allocation2] sm:$0xff]  ;;  %v70_v13 = vmul.f32 %v1168_v5, %v1168_v5  ;;  %v71_v14 = vmul.f32 %v1176_v9, %v1176_v9  ;;  %v1195_v16 = vld [vmem:[#allocation5 + $0x28] sm:$0xff]  ;;  %v72_v19 = vmul.f32 %v1193_v15, %v1193_v15  ;;  %v1211_v22 = vld [vmem:[#allocation5 + $0x38] sm:$0xff]  ;;  %s994_s6 = scalar_lea.vmem %s693_s30, 16  ;;  %s998_s7 = scalar_lea.vmem %s693_s30, 32 }
  0x3c   :  { %866 = vmatprep.subr.msk.bf16.mxu1 %vm1160_vm2, %v864_v6  ;;  %v849_v12 = vpack.c.bf16 %v69_v8, %v68_v7  ;;  %829 = vmatprep.mubr.msk.f32.mxu1 %vm76_vm1, %v66_v11  ;;  %v876_v18 = vpack.c.bf16 %v1195_v16, %v1193_v15  ;;  %v73_v20 = vmul.f32 %v1195_v16, %v1195_v16  ;;  %v1209_v21 = vld [vmem:[#allocation5 + $0x30] sm:$0xff]  ;;  %v67_v28 = vld [vmem:[#allocation2 + $0x8] sm:$0xff]  ;;  %v280_v32 = vshrl.u32 %v279_v31, 7  ;;  %p995_p10 = scmp.ne.s32.totalorder %s693_s30, %s994_s6  ;;  %p999_p11 = scmp.lt.s32.totalorder %s693_s30, %s693_s30 }
  0x3d   :  { %869 = vmatpush3.bf16.xpose.msk.msra.mxu1 %vm1160_vm2, %v864_v6  ;;  %v853_v17 = vpack.c.bf16 %v71_v14, %v70_v13  ;;  %v882_v24 = vpack.c.bf16 %v1211_v22, %v1209_v21  ;;  %v74_v25 = vmul.f32 %v1209_v21, %v1209_v21  ;;  %v75_v26 = vmul.f32 %v1211_v22, %v1211_v22  ;;  %p1000_p12 = scmp.lt.s32.totalorder %s998_s7, %s994_s6 }
  0x3e   :  { %851 = vmatpush3.bf16.xpose.msk.msra.mxu0 %vm1160_vm2, %v849_v12  ;;  %872 = vmatprep.subr.msk.bf16.mxu1 %vm1160_vm2, %v870_v10  ;;  %v857_v23 = vpack.c.bf16 %v73_v20, %v72_v19  ;;  %v888_v29 = vpack.c.bf16 %v67_v28, %v66_v11  ;;  %v281_v33 = vsub.s32 0, %v280_v32  ;;  %v286_v43 = vand.u32 127, %v279_v31 }
  0x3f   :  { %852 = vmatprep.subr.bf16.mxu0 %v1073_v0  ;;  %v861_v27 = vpack.c.bf16 %v75_v26, %v74_v25  ;;  %p1001_p13 = por %p1000_p12, %p999_p11 }
  0x41   :  { %p1002_p0 = pnand %p1001_p13, %p995_p10 }
  0x45   :  { %875 = vmatpush3.bf16.xpose.msk.msra.mxu1 %vm1160_vm2, %v870_v10 }
  0x46   :  { %855 = vmatpush3.bf16.xpose.msk.msra.mxu0 %vm1160_vm2, %v853_v17  ;;  %878 = vmatprep.subr.msk.bf16.mxu1 %vm1160_vm2, %v876_v18 }
  0x47   :  { %856 = vmatprep.subr.bf16.mxu0 %v1073_v0 }
  0x4d   :  { %881 = vmatpush3.bf16.xpose.msk.msra.mxu1 %vm1160_vm2, %v876_v18 }
  0x4e   :  { %859 = vmatpush3.bf16.xpose.msk.msra.mxu0 %vm1160_vm2, %v857_v23  ;;  %884 = vmatprep.subr.msk.bf16.mxu1 %vm1160_vm2, %v882_v24 }
  0x4f   :  { %860 = vmatprep.subr.bf16.mxu0 %v1073_v0 }
  0x55   :  { %887 = vmatpush3.bf16.xpose.msk.msra.mxu1 %vm1160_vm2, %v882_v24 }
  0x56   :  { %863 = vmatpush3.bf16.xpose.msk.msra.mxu0 %vm1160_vm2, %v861_v27  ;;  %892 = vmatprep.subr.bf16.mxu1 %v888_v29 }
  0x57   :  { %889 = vmatprep.subr.bf16.mxu0 %v888_v29 }
  0x5c   :  { %830 = vmatmul.mubr.msk.f32.vlgmr.msra.gmra.mrb[0].mxu1 %vm76_vm1, %v67_v28  ;;  %v348_v28 = vld [vmem:[#allocation7] sm:$0x1] }
  0x5d   :  { %811 = vmatmul.mubr.msk.f32.vlgmr.msra.gmra.mrb[0].mxu0 %vm76_vm1, %v1076_v30  ;;  %893 = vmatpush3.bf16.msra.mxu1 %v888_v29 }
  0x5e   :  { %891 = vmatpush3.bf16.msra.mxu0 %v888_v29  ;;  %v1077_v29 = vmov 0  }
 0x12f   :  { %v831_v34 = vpop.f32.mrb[0].mxu1 }
 0x130   :  { %v170_v35 = vpop.f32.mrb[0].mxu0  ;;  %v270_v36 = vpop.f32.mrb[1].mxu1 }
 0x131   :  { %v282_v37 = vrot.slane %v170_v35, %v281_v33  ;;  %v812_v38 = vpop.f32.mrb[1].mxu0 }
 0x133   :  { %v284_v39 = vsub.f32 %v282_v37, %v831_v34  ;;  %v283_v40 = vsub.f32 %v282_v37, %v270_v36 }
 0x135   :  { %v288_v41 = vsel %vm287_vm3, %v283_v40, inf  ;;  %v291_v42 = vsel %vm287_vm3, %v284_v39, inf }
 0x136   :  { %289 = vmin.xlane.f32.xlu0 %v288_v41 }
 0x13a   :  { %292 = vmin.xlane.f32.xlu0 %v291_v42 }
 0x1c3   :  { %v290_v44 = vpop.xlane.xlu0 %289 }
 0x1c4   :  { %vm294_vm4 = vcmp.eq.f32.partialorder %v283_v40, %v290_v44  ;;  %v1078_v40 = vmov 32  }
 0x1c5   :  { %v296_v45 = vsel %vm294_vm4, %v286_v43, 64  ;;  %910 = vset.pattern.permute.xlu1 %v1078_v40 }
 0x1c6   :  { %v298_v46 = vsel %vm287_vm3, %v296_v45, 2147483647 }
 0x1c7   :  { %v293_v47 = vpop.xlane.xlu0 %292  ;;  %v300_v48 = vshra.s32 %v298_v46, 16  ;;  %v299_v54 = vand.u32 65535, %v298_v46 }
 0x1c8   :  { %vm295_vm5 = vcmp.eq.f32.partialorder %v284_v39, %v293_v47 }
 0x1c9   :  { %v297_v49 = vsel %vm295_vm5, %v286_v43, 64  ;;  %v302_v50 = vcvt.s32.f32 %v300_v48  ;;  %v301_v56 = vcvt.s32.f32 %v299_v54 }
 0x1ca   :  { %v313_v51 = vsel %vm287_vm3, %v297_v49, 2147483647 }
 0x1cb   :  { %303 = vmin.xlane.f32.xlu1 %v302_v50  ;;  %v315_v52 = vshra.s32 %v313_v51, 16  ;;  %v314_v57 = vand.u32 65535, %v313_v51 }
 0x1cd   :  { %v317_v53 = vcvt.s32.f32 %v315_v52  ;;  %v316_v60 = vcvt.s32.f32 %v314_v57 }
 0x1cf   :  { %318 = vmin.xlane.f32.xlu1 %v317_v53 }
 0x258   :  { %v304_v55 = vpop.xlane.xlu1 %303 }
 0x259   :  { %vm305_vm6 = vcmp.eq.f32.partialorder %v302_v50, %v304_v55  ;;  %v310_v62 = vcvt.f32.s32 %v304_v55 }
 0x25a   :  { %v306_v58 = vsel %vm305_vm6, %v301_v56, inf }
 0x25b   :  { %307 = vmin.xlane.f32.xlu0 %v306_v58  ;;  %v311_v0 = vshll.u32 %v310_v62, 16 }
 0x25c   :  { %v319_v59 = vpop.xlane.xlu1 %318 }
 0x25d   :  { %vm320_vm7 = vcmp.eq.f32.partialorder %v317_v53, %v319_v59  ;;  %v325_v2 = vcvt.f32.s32 %v319_v59 }
 0x25e   :  { %v321_v61 = vsel %vm320_vm7, %v316_v60, inf }
 0x25f   :  { %322 = vmin.xlane.f32.xlu1 %v321_v61  ;;  %v326_v10 = vshll.u32 %v325_v2, 16 }
 0x2e8   :  { %v308_v63 = vpop.xlane.xlu0 %307 }
 0x2e9   :  { %v309_v6 = vcvt.f32.s32 %v308_v63 }
 0x2eb   :  { %v312_v7 = vadd.s32 %v311_v0, %v309_v6 }
 0x2ec   :  { %v323_v8 = vpop.xlane.xlu1 %322 }
 0x2ed   :  { %v324_v11 = vcvt.f32.s32 %v323_v8  ;;  %vm328_vm8 = vcmp.eq.s32.totalorder %v286_v43, %v312_v7 }
 0x2ee   :  { %v738_v12 = vsel %vm328_vm8, 1.0, %v1075_v1 }
 0x2ef   :  { %v327_v13 = vadd.s32 %v326_v10, %v324_v11  ;;  %351 = vxpose.xlu0.b32.start [1/2] (short) (narrow) %v738_v12, 64  ;;  %v334_v17 = vsel %vm287_vm3, %v738_v12, 0.0 }
 0x2f1   :  { %vm329_vm9 = vcmp.eq.s32.totalorder %v286_v43, %v327_v13 }
 0x2f2   :  { %v739_v14 = vsel %vm329_vm9, 1.0, %v1075_v1 }
 0x2f3   :  { %v335_v18 = vsel %vm287_vm3, %v739_v14, 0.0  ;;  %352 = vxpose.xlu0.b32.end [2/2] (short) (narrow) %v739_v14, 64 }
 0x2f4   :  { %v336_v19 = vadd.f32 %v335_v18, %v334_v17 }
 0x2f6   :  { %v337_v20 = vrot.slane %v336_v19, 4 }
 0x2f8   :  { %v338_v23 = vadd.f32 %v337_v20, %v336_v19 }
 0x2fa   :  { %v339_v24 = vrot.slane %v338_v23, 2 }
 0x2fc   :  { %v340_v25 = vadd.f32 %v339_v24, %v338_v23 }
 0x2fe   :  { %v341_v26 = vrot.slane %v340_v25, 1 }
 0x300   :  { %v342_v27 = vadd.f32 %v341_v26, %v340_v25 }
 0x302   :  { %vm343_vm11 = vcmp.gt.f32.partialorder %v342_v27, 0.0 }
 0x303   :  { %v344_v30 = vsel %vm343_vm11, 1, %v1077_v29  ;;  %v740_v31 = vsel %vm343_vm11, 1.0, %v1075_v1 }
 0x304   :  { %347 = vst.msk [vmem:[#allocation9] sm:$0x1] %vm346_vm10, %v740_v31  ;;  %v349_v32 = vadd.s32 %v348_v28, %v344_v30 }
 0x306   :  { %350 = vst.msk [vmem:[#allocation11] sm:$0x1] %vm346_vm10, %v349_v32 }
 0x31c   :  { %911 = vset.pattern.permute.xlu0 %v1078_v40 }
 0x36f   :  { %v367_v33 = vpop.trf.xlu0 }
 0x370   :  { %836 = vmatprep.mubr.msk.f32.mxu0 %vm383_vm12, %v367_v33 }
 0x373   :  { %v368_v34 = vpop.trf.xlu0 }
 0x374   :  { %837 = vmatmul.mubr.msk.f32.vlgmr.msra.gmra.mrb[2].mxu0 %vm383_vm12, %v368_v34 }
 0x377   :  { %v369_v35 = vpop.trf.xlu0 }
 0x378   :  { %839 = vmatprep.mubr.msk.f32.mxu0 %vm383_vm12, %v369_v35 }
 0x37b   :  { %v370_v36 = vpop.trf.xlu0 }
 0x37c   :  { %840 = vmatmul.mubr.msk.f32.gmra.mrb[4].mxu0 %vm383_vm12, %v370_v36 }
 0x37f   :  { %v371_v37 = vpop.trf.xlu0 }
 0x380   :  { %842 = vmatprep.mubr.msk.f32.mxu1 %vm383_vm12, %v371_v37 }
 0x383   :  { %v372_v1 = vpop.trf.xlu0 }
 0x384   :  { %843 = vmatmul.mubr.msk.f32.vlgmr.msra.gmra.mrb[2].mxu1 %vm383_vm12, %v372_v1 }
 0x387   :  { %v373_v38 = vpop.trf.xlu0 }
 0x388   :  { %845 = vmatprep.mubr.msk.f32.mxu1 %vm383_vm12, %v373_v38 }
 0x38b   :  { %v374_v39 = vpop.trf.xlu0 }
 0x38c   :  { %846 = vmatmul.mubr.msk.f32.gmra.mrb[4].mxu1 %vm383_vm12, %v374_v39 }
 0x447   :  { %v1249_v41 = vpop.f32.mrb[2].mxu0 }
 0x448   :  { %v1251_v42 = vpop.f32.mrb[3].mxu0  ;;  %vm514_vm13 = vcmp.gt.f32.partialorder %v1249_v41, 0.0 }
 0x449   :  { %v586_v43 = vsel %vm514_vm13, 1, %v1077_v29  ;;  %v522_v44 = vsel %vm514_vm13, %v1249_v41, 1.0  ;;  %vm513_vm14 = vcmp.gt.f32.partialorder %v1251_v42, 0.0 }
 0x44a   :  { %597 = vperm.xlu0 %911, %v586_v43   ;;  %536 = vperm.xlu1 %910, %v522_v44   ;;  %v521_v45 = vsel %vm513_vm14, %v1251_v42, 1.0  ;;  %v585_v48 = vsel %vm513_vm14, 1, %v1077_v29 }
 0x44e   :  { %531 = vperm.xlu1 %910, %v521_v45  }
 0x44f   :  { %v1258_v46 = vpop.f32.mrb[4].mxu0 }
 0x450   :  { %v1260_v47 = vpop.f32.mrb[5].mxu0  ;;  %vm516_vm15 = vcmp.gt.f32.partialorder %v1258_v46, 0.0 }
 0x451   :  { %v524_v49 = vsel %vm516_vm15, %v1258_v46, 1.0  ;;  %v588_v52 = vsel %vm516_vm15, 1, %v1077_v29  ;;  %vm515_vm0 = vcmp.gt.f32.partialorder %v1260_v47, 0.0 }
 0x452   :  { %594 = vperm.xlu1 %910, %v585_v48   ;;  %v523_v53 = vsel %vm515_vm0, %v1260_v47, 1.0  ;;  %v587_v56 = vsel %vm515_vm0, 1, %v1077_v29 }
 0x456   :  { %546 = vperm.xlu1 %910, %v524_v49  }
 0x457   :  { %v1265_v50 = vpop.f32.mrb[2].mxu1 }
 0x458   :  { %v1267_v51 = vpop.f32.mrb[3].mxu1  ;;  %vm518_vm1 = vcmp.gt.f32.partialorder %v1265_v50, 0.0 }
 0x459   :  { %v526_v57 = vsel %vm518_vm1, %v1265_v50, 1.0  ;;  %vm517_vm2 = vcmp.gt.f32.partialorder %v1267_v51, 0.0  ;;  %v590_v62 = vsel %vm518_vm1, 1, %v1077_v29 }
 0x45a   :  { %603 = vperm.xlu1 %910, %v588_v52   ;;  %v525_v58 = vsel %vm517_vm2, %v1267_v51, 1.0  ;;  %v589_v59 = vsel %vm517_vm2, 1, %v1077_v29 }
 0x45e   :  { %541 = vperm.xlu1 %910, %v523_v53  }
 0x45f   :  { %v1272_v54 = vpop.f32.mrb[4].mxu1 }
 0x460   :  { %v1275_v55 = vpop.f32.mrb[5].mxu1  ;;  %vm520_vm3 = vcmp.gt.f32.partialorder %v1272_v54, 0.0 }
 0x461   :  { %v528_v60 = vsel %vm520_vm3, %v1272_v54, 1.0  ;;  %vm519_vm4 = vcmp.gt.f32.partialorder %v1275_v55, 0.0  ;;  %v592_v0 = vsel %vm520_vm3, 1, %v1077_v29 }
 0x462   :  { %600 = vperm.xlu1 %910, %v587_v56   ;;  %v527_v61 = vsel %vm519_vm4, %v1275_v55, 1.0  ;;  %v591_v63 = vsel %vm519_vm4, 1, %v1077_v29 }
 0x466   :  { %556 = vperm.xlu1 %910, %v526_v57  }
 0x46a   :  { %551 = vperm.xlu1 %910, %v525_v58  }
 0x46e   :  { %606 = vperm.xlu1 %910, %v589_v59  }
 0x472   :  { %566 = vperm.xlu1 %910, %v528_v60  }
 0x476   :  { %561 = vperm.xlu1 %910, %v527_v61  }
 0x47a   :  { %609 = vperm.xlu1 %910, %v590_v62  }
 0x47e   :  { %612 = vperm.xlu1 %910, %v591_v63  }
 0x482   :  { %615 = vperm.xlu1 %910, %v592_v0  }
 0x483   :  { %1005 = shalt.err (!%p1002_p0)
}
 0x484   :  { %s1006_s10 = scalar_lea.hbm %s1357_s4, 16 }
 0x485   :  { %p1007_p1 = scmp.ne.s32.totalorder %s1357_s4, %s1006_s10  ;;  %p1010_p2 = scmp.lt.u32.totalorder %s1006_s10, %s1357_s4 }
 0x487   :  { %p1012_p3 = pnand %p1010_p2, %p1007_p1 }
 0x489   :  { %1015 = shalt.err (!%p1012_p3)
}
 0x48a   :  { %695 = dma.vmem_to_hbm [thread:$0]  %s693_s30, 16, %s1357_s4, [#allocation10]  }
 0x48b   :  { %s1080_s1 = smov [#allocation11]  }
 0x48c   :  { %s702_s17 = sshll.u32 %s1080_s1, 4  ;;  %s703_s17 = int_to_ptr.vmem [resolvable:$true] %s702_s17 }
 0x48d   :  { %s1016_s18 = scalar_lea.vmem %s703_s17, 16  ;;  %s1020_s19 = scalar_lea.vmem %s703_s17, 32 }
 0x48e   :  { %p1017_p4 = scmp.ne.s32.totalorder %s703_s17, %s1016_s18  ;;  %p1021_p5 = scmp.lt.s32.totalorder %s703_s17, %s703_s17 }
 0x48f   :  { %p1022_p6 = scmp.lt.s32.totalorder %s1020_s19, %s1016_s18 }
 0x491   :  { %p1023_p7 = por %p1022_p6, %p1021_p5 }
 0x493   :  { %p1024_p8 = pnand %p1023_p7, %p1017_p4 }
 0x495   :  { %1027 = shalt.err (!%p1024_p8)
}
 0x496   :  { %s1028_s23 = scalar_lea.hbm %s1358_s5, 16 }
 0x497   :  { %p1029_p9 = scmp.ne.s32.totalorder %s1358_s5, %s1028_s23  ;;  %p1032_p10 = scmp.lt.u32.totalorder %s1028_s23, %s1358_s5 }
 0x499   :  { %p1034_p11 = pnand %p1032_p10, %p1029_p9 }
 0x49b   :  { %1037 = shalt.err (!%p1034_p11)
}
 0x49c   :  { %705 = dma.vmem_to_hbm [thread:$0]  %s703_s17, 16, %s1358_s5, [#allocation10]   ;;  %vm665_vm6 = vcmask 257024  }
 0x49d   :  { %s1081_s5 = smov [#allocation8]  }
 0x49e   :  { %s679_s0 = sshll.u32 %s1081_s5, 4  ;;  %s680_s0 = int_to_ptr.vmem [resolvable:$true] %s679_s0 }
 0x49f   :  { %s1038_s21 = scalar_lea.vmem %s680_s0, 512  ;;  %p1043_p13 = scmp.lt.s32.totalorder %s680_s0, %s680_s0 }
 0x4a0   :  { %p1039_p12 = scmp.ne.s32.totalorder %s680_s0, %s1038_s21  ;;  %p1044_p0 = scmp.lt.s32.totalorder %s1038_s21, %s1038_s21 }
 0x4a2   :  { %p1045_p1 = por %p1044_p0, %p1043_p13 }
 0x4a4   :  { %p1046_p2 = pnand %p1045_p1, %p1039_p12 }
 0x4c9   :  { %v537_v2 = vpop.permute.xlu1 %536  ;;  %v598_v8 = vpop.permute.xlu0 %597 }
 0x4ca   :  { %912 = vrcp.f32 %v537_v2  ;;  %vm618_vm5 = vcmp.eq.s32.totalorder %v598_v8, 1 }
 0x4cd   :  { %v532_v6 = vpop.permute.xlu1 %531 }
 0x4ce   :  { %914 = vrcp.f32 %v532_v6 }
 0x4d1   :  { %v595_v7 = vpop.permute.xlu1 %594 }
 0x4d2   :  { %vm617_vm7 = vcmp.eq.s32.totalorder %v595_v7, 1 }
 0x4d4   :  { %v913_v10 = vpop.eup %912 }
 0x4d5   :  { %v572_v11 = vmul.f32 %v913_v10, %v1249_v41  ;;  %v547_v12 = vpop.permute.xlu1 %546 }
 0x4d6   :  { %916 = vrcp.f32 %v547_v12 }
 0x4d7   :  { %v626_v13 = vsel %vm618_vm5, %v572_v11, %v1166_v4 }
 0x4d8   :  { %v915_v14 = vpop.eup %914  ;;  %v758_v17 = vpack.c.bf16 %v626_v13, %v626_v13 }
 0x4d9   :  { %v570_v18 = vmul.f32 %v915_v14, %v1251_v42  ;;  %v604_v19 = vpop.permute.xlu1 %603 }
 0x4da   :  { %667 = vst.msk [vmem:[#allocation8 + $0x4] sm:$0xf] %vm665_vm6, %v758_v17  ;;  %vm620_vm8 = vcmp.eq.s32.totalorder %v604_v19, 1 }
 0x4db   :  { %v625_v20 = vsel %vm617_vm7, %v570_v18, %v1164_v3 }
 0x4dc   :  { %v757_v23 = vpack.c.bf16 %v625_v20, %v625_v20 }
 0x4dd   :  { %v542_v24 = vpop.permute.xlu1 %541 }
 0x4de   :  { %666 = vst.msk [vmem:[#allocation8] sm:$0xf] %vm665_vm6, %v757_v23  ;;  %918 = vrcp.f32 %v542_v24 }
 0x4e0   :  { %v917_v25 = vpop.eup %916 }
 0x4e1   :  { %v576_v26 = vmul.f32 %v917_v25, %v1258_v46  ;;  %v601_v27 = vpop.permute.xlu1 %600 }
 0x4e2   :  { %vm619_vm9 = vcmp.eq.s32.totalorder %v601_v27, 1 }
 0x4e3   :  { %v628_v4 = vsel %vm620_vm8, %v576_v26, %v1176_v9 }
 0x4e4   :  { %v760_v28 = vpack.c.bf16 %v628_v4, %v628_v4 }
 0x4e5   :  { %v557_v29 = vpop.permute.xlu1 %556 }
 0x4e6   :  { %669 = vst.msk [vmem:[#allocation8 + $0xc] sm:$0xf] %vm665_vm6, %v760_v28 }
 0x4e8   :  { %v919_v30 = vpop.eup %918 }
 0x4e9   :  { %v574_v31 = vmul.f32 %v919_v30, %v1260_v47  ;;  %v552_v3 = vpop.permute.xlu1 %551 }
 0x4ea   :  { %920 = vrcp.f32 %v552_v3 }
 0x4eb   :  { %v627_v32 = vsel %vm619_vm9, %v574_v31, %v1168_v5  ;;  %922 = vrcp.f32 %v557_v29 }
 0x4ec   :  { %v759_v33 = vpack.c.bf16 %v627_v32, %v627_v32 }
 0x4ed   :  { %v607_v34 = vpop.permute.xlu1 %606 }
 0x4ee   :  { %668 = vst.msk [vmem:[#allocation8 + $0x8] sm:$0xf] %vm665_vm6, %v759_v33  ;;  %vm621_vm10 = vcmp.eq.s32.totalorder %v607_v34, 1 }
 0x4f1   :  { %v567_v35 = vpop.permute.xlu1 %566 }
 0x4f2   :  { %924 = vrcp.f32 %v567_v35 }
 0x4f4   :  { %v921_v36 = vpop.eup %920 }
 0x4f5   :  { %v578_v9 = vmul.f32 %v921_v36, %v1267_v51  ;;  %v562_v37 = vpop.permute.xlu1 %561  ;;  %v923_v1 = vpop.eup %922 }
 0x4f6   :  { %926 = vrcp.f32 %v562_v37  ;;  %v580_v40 = vmul.f32 %v923_v1, %v1265_v50 }
 0x4f7   :  { %v629_v38 = vsel %vm621_vm10, %v578_v9, %v1193_v15 }
 0x4f8   :  { %v761_v39 = vpack.c.bf16 %v629_v38, %v629_v38 }
 0x4f9   :  { %v610_v5 = vpop.permute.xlu1 %609 }
 0x4fa   :  { %670 = vst.msk [vmem:[#allocation8 + $0x10] sm:$0xf] %vm665_vm6, %v761_v39  ;;  %vm622_vm11 = vcmp.eq.s32.totalorder %v610_v5, 1 }
 0x4fb   :  { %v630_v41 = vsel %vm622_vm11, %v580_v40, %v1195_v16 }
 0x4fc   :  { %v762_v42 = vpack.c.bf16 %v630_v41, %v630_v41  ;;  %v925_v44 = vpop.eup %924 }
 0x4fd   :  { %v613_v43 = vpop.permute.xlu1 %612  ;;  %v584_v15 = vmul.f32 %v925_v44, %v1272_v54 }
 0x4fe   :  { %671 = vst.msk [vmem:[#allocation8 + $0x14] sm:$0xf] %vm665_vm6, %v762_v42  ;;  %vm623_vm12 = vcmp.eq.s32.totalorder %v613_v43, 1 }
 0x500   :  { %v927_v45 = vpop.eup %926 }
 0x501   :  { %v582_v46 = vmul.f32 %v927_v45, %v1275_v55  ;;  %v616_v47 = vpop.permute.xlu1 %615 }
 0x502   :  { %vm624_vm13 = vcmp.eq.s32.totalorder %v616_v47, 1 }
 0x503   :  { %v631_v48 = vsel %vm623_vm12, %v582_v46, %v1209_v21  ;;  %v632_v49 = vsel %vm624_vm13, %v584_v15, %v1211_v22 }
 0x504   :  { %v763_v16 = vpack.c.bf16 %v631_v48, %v631_v48  ;;  %v764_v50 = vpack.c.bf16 %v632_v49, %v632_v49 }
 0x506   :  { %672 = vst.msk [vmem:[#allocation8 + $0x18] sm:$0xf] %vm665_vm6, %v763_v16  ;;  %673 = vst.msk [vmem:[#allocation8 + $0x1c] sm:$0xf] %vm665_vm6, %v764_v50 }
 0x507   :  { %1049 = shalt.err (!%p1046_p2)
}
 0x508   :  { %s1050_s30 = scalar_lea.hbm %s1356_s3, 512 }
 0x509   :  { %p1051_p3 = scmp.ne.s32.totalorder %s1356_s3, %s1050_s30  ;;  %p1054_p4 = scmp.lt.u32.totalorder %s1050_s30, %s1356_s3 }
 0x50b   :  { %p1056_p5 = pnand %p1054_p4, %p1051_p3 }
 0x50d   :  { %1059 = shalt.err (!%p1056_p5)
}
 0x50e   :  { %s1082_s10 = smov 64   ;;  %s1083_s11 = smov 4  }
 0x50f   :  { %685 = dma.vmem_to_hbm [thread:$0]  %s680_s0, 512, %s1356_s3, [#allocation4], %s1082_s10, %s1082_s10, %s1083_s11  }
 0x510   :  { %1064 = dma.done.wait [#allocation4], 512  }
 0x511   :  { %1065 = vsyncadd [#allocation4], 4294966784 }
 0x512   :  { %1066 = dma.done.wait [#allocation10], 32  }
 0x513   :  { %1067 = vsyncadd [#allocation10], 4294967264 }
 0x514   :  { %715 = vsyncpa [#allocation3], 1 }
 0x515   :  { %716 = vsyncpa [#allocation6], 1 }
 0x516   :  { %717 = vsyncpa [#allocation4], 1 }
 0x517   :  { %718 = vsyncpa [#allocation10], 1 }

</bundles_post_ra>
